<compile_context>
chip_gen: v7x
topology: tpu7x:2x2x1
jax: 0.10.0
libtpu: 0.0.40
codegen_flags: <defaults>
</compile_context>

<pallas_src>
import math
import numpy as np
import jax
import jax.numpy as jnp
from jax.experimental import pallas as pl
from jax.experimental.pallas import tpu as pltpu


def make_cosine_encoding(
    inpt_dim: int,
    encoding_dim: int,
    scheme: str = "exponential",
    min_value=0.0,
    max_value=1.0,
    do_sin: bool = False,
    max_block_bytes: int = 1 << 20,   # target f32 bytes per output block (per buffer)
    out_dtype=jnp.float32,            # jnp.bfloat16 halves HBM write traffic if acceptable
    check_bounds: bool = False,       # host sync; off by default (perf + jittability)
):
    """Builds a callable reproducing CosineEncodingLayer.forward on TPU."""
    if do_sin:
        assert encoding_dim % 2 == 0
    freq_dim = encoding_dim // 2 if do_sin else encoding_dim
    outp_dim = encoding_dim * inpt_dim

    # ---- host-side constants (the module's buffers, pre-folded) ---------------
    freqs = np.arange(freq_dim, dtype=np.float64)
    if scheme == "exponential":
        freqs = 2.0 ** freqs
    elif scheme == "linear":
        freqs = freqs + 1.0
    else:
        raise ValueError(f"Unrecognised frequency scaling: {scheme}")

    # NOTE: faithfully reproduces the module's (x + min) * pi / (max + min) formula.
    min_v = np.broadcast_to(np.asarray(min_value, dtype=np.float64), (inpt_dim,))
    max_v = np.broadcast_to(np.asarray(max_value, dtype=np.float64), (inpt_dim,))
    scale = np.pi / (max_v + min_v)                        # (D,)

    # Column order within one output row is (f, d) with f major (torch flatten(-2)).
    freq_col = np.repeat(freqs, inpt_dim)                  # (F*D,), index f*D+d -> freq[f]
    w_pre = freq_col * np.tile(scale, freq_dim)            # freq[f] * scale[d]
    b_pre = freq_col * np.tile(scale * min_v, freq_dim)    # freq[f] * scale[d] * min[d]
    if do_sin:
        w_unit = np.concatenate([w_pre, w_pre])                  # (outp_dim,)
        b_unit = np.concatenate([b_pre, b_pre - np.pi / 2.0])    # sin(z) = cos(z - pi/2)
    else:
        w_unit, b_unit = w_pre, b_pre

    # ---- lane-dense row grouping ----------------------------------------------
    # Smallest G such that the grouped output width G*outp_dim is a multiple of 128
    # (full, unmasked vector stores). Fallback for awkward (odd) widths: just wide.
    G = math.lcm(outp_dim, 128) // outp_dim
    if G > 64:
        G = max(1, -(-256 // outp_dim))
    wide = G * outp_dim
    in_w = G * inpt_dim

    coefs = jnp.asarray(
        np.stack([np.tile(w_unit, G), np.tile(b_unit, G)]).astype(np.float32)
    )                                                      # (2, wide), constant-resident

    # Max grouped rows per block: ~max_block_bytes of f32 output, multiple of 8.
    cap = max(8, (max_block_bytes // (wide * 4)) // 8 * 8)

    # ---- kernel ---------------------------------------------------------------
    def kernel(x_ref, c_ref, o_ref):
        # x_ref: (TN, G*D)   c_ref: (2, G*outp_dim)   o_ref: (TN, G*outp_dim)
        x = x_ref[...].astype(jnp.float32)
        if G == 1:
            # column order (f, d) matches torch flatten(-2)
            xw = jnp.tile(x, (1, encoding_dim))
        else:
            # per-group lane replication -> column order (g, f, d), matching the
            # free wrapper reshape of the output.
            parts = [
                jnp.tile(x[:, g * inpt_dim:(g + 1) * inpt_dim], (1, encoding_dim))
                for g in range(G)
            ]
            xw = jnp.concatenate(parts, axis=-1)
        w = c_ref[0:1, :]                                  # freq * pi/(max+min)
        b = c_ref[1:2, :]                                  # min-shift (+ sin phase)
        o_ref[...] = jnp.cos(xw * w + b).astype(o_ref.dtype)

    # ---- wrapper --------------------------------------------------------------
    def _forward(x):
        lead = x.shape[:-1]
        assert x.shape[-1] == inpt_dim
        n = 1
        for s in lead:
            n *= s
        x2 = x.reshape(n, inpt_dim).astype(jnp.float32)

        n_pad = -(-n // G) * G                   # only pad to a multiple of G
        if n_pad != n:
            x2 = jnp.pad(x2, ((0, n_pad - n), (0, 0)))
        ng = n_pad // G
        xg = x2.reshape(ng, in_w)                # free, contiguous reshape

        tn = ng if ng <= cap else cap            # single block or 8-aligned tiles
        grid = (pl.cdiv(ng, tn),)                # ragged tail handled by Pallas

        out = pl.pallas_call(
            kernel,
            out_shape=jax.ShapeDtypeStruct((ng, wide), out_dtype),
            grid_spec=pl.GridSpec(
                grid=grid,
                in_specs=[
                    pl.BlockSpec((tn, in_w), lambda i: (i, 0)),
                    pl.BlockSpec((2, wide), lambda i: (0, 0)),  # constant-resident
                ],
                out_specs=pl.BlockSpec((tn, wide), lambda i: (i, 0)),
            ),
            compiler_params=pltpu.CompilerParams(
                dimension_semantics=("parallel",),
            ),
        )(xg, coefs)

        out = out.reshape(n_pad, outp_dim)       # free, contiguous reshape
        if n_pad != n:
            out = out[:n]
        return out.reshape(*lead, outp_dim)

    fwd_jit = jax.jit(_forward)

    def forward(x):
        if check_bounds:
            # TODO(synk): mirrors the torch warning prints; forces a device->host
            # sync and breaks jit, so it is disabled by default.
            xv = np.asarray(x)
            if np.any(xv > np.asarray(max_value)):
                print("Warning! Passing values to CosineEncodingLayer encoding above max!")
            if np.any(xv < np.asarray(min_value)):
                print("Warning! Passing values to CosineEncodingLayer encoding below min!")
            return _forward(x)
        return fwd_jit(x)

    return forward


def _reference(x, inpt_dim, encoding_dim, scheme, min_value, max_value, do_sin):
    """Pure-jnp replica of the torch forward for verification."""
    freq_dim = encoding_dim // 2 if do_sin else encoding_dim
    freqs = np.arange(freq_dim, dtype=np.float32)
    freqs = 2.0 ** freqs if scheme == "exponential" else freqs + 1.0
    freqs = jnp.asarray(freqs)[:, None]                          # (F, 1)
    mn = jnp.asarray(min_value, dtype=jnp.float32)
    mx = jnp.asarray(max_value, dtype=jnp.float32)
    xs = (x + mn) * math.pi / (mx + mn)
    y = xs[..., None, :] * freqs                                 # (..., F, D)
    y = y.reshape(*x.shape[:-1], freq_dim * inpt_dim)
    if do_sin:
        return jnp.concatenate([jnp.cos(y), jnp.sin(y)], axis=-1)
    return jnp.cos(y)


if __name__ == "__main__":
    root = jax.random.PRNGKey(0)
    k1, k2, k3 = jax.random.split(root, 3)

    # Config 1: exponential scheme, sin+cos, scalar bounds, small shape (single block).
    inpt_dim, encoding_dim = 4, 8
    x1 = jax.random.uniform(k1, (2, 8, inpt_dim), dtype=jnp.float32)      # in [0, 1]
    layer1 = make_cosine_encoding(inpt_dim, encoding_dim, scheme="exponential",
                                  min_value=0.0, max_value=1.0, do_sin=True)
    out1 = jax.block_until_ready(layer1(x1))
    ref1 = _reference(x1, inpt_dim, encoding_dim, "exponential", 0.0, 1.0, True)
    assert out1.shape == (2, 8, encoding_dim * inpt_dim), out1.shape
    np.testing.assert_allclose(np.asarray(out1), np.asarray(ref1), rtol=1e-4, atol=5e-5)

    # Config 2: linear scheme, cos-only, per-feature max, N divisible by the group
    # size (no padding path), single wide block.
    max2 = [1.0, 2.0, 3.0, 4.0]
    x2 = jax.random.uniform(k2, (3, 1000, inpt_dim), dtype=jnp.float32) * jnp.asarray(max2)
    layer2 = make_cosine_encoding(inpt_dim, encoding_dim, scheme="linear",
                                  min_value=0.0, max_value=max2, do_sin=False)
    out2 = jax.block_until_ready(layer2(x2))
    ref2 = _reference(x2, inpt_dim, encoding_dim, "linear", 0.0, max2, False)
    assert out2.shape == (3, 1000, encoding_dim * inpt_dim), out2.shape
    np.testing.assert_allclose(np.asarray(out2), np.asarray(ref2), rtol=1e-4, atol=5e-5)

    # Config 3: odd feature width (D=3, E=6 -> outp=18, G=64), N not a multiple of G,
    # small block budget to exercise the multi-block + ragged-tail grid path.
    d3, e3 = 3, 6
    x3 = jax.random.uniform(k3, (1700, d3), dtype=jnp.float32)            # in [0, 1]
    layer3 = make_cosine_encoding(d3, e3, scheme="exponential",
                                  min_value=0.0, max_value=1.0, do_sin=True,
                                  max_block_bytes=96 * 1024)
    out3 = jax.block_until_ready(layer3(x3))
    ref3 = _reference(x3, d3, e3, "exponential", 0.0, 1.0, True)
    assert out3.shape == (1700, e3 * d3), out3.shape
    np.testing.assert_allclose(np.asarray(out3), np.asarray(ref3), rtol=1e-4, atol=5e-5)

    print("KERNEL_OK")
</pallas_src>

<mosaic_0001>
module attributes {stable_mosaic.version = 11 : i64} {
  func.func @kernel(%arg0: i32, %arg1: memref<4x16xf32, #tpu.memory_space<vmem>>, %arg2: memref<2x128xf32, #tpu.memory_space<vmem>>, %arg3: memref<4x128xf32, #tpu.memory_space<vmem>>) attributes {dimension_semantics = [#tpu.dimension_semantics<parallel>], iteration_bounds = array<i64: 1>, scalar_prefetch = 0 : i64, scratch_operands = 0 : i64, tpu.core_type = #tpu.core_type<tc>, window_params = [{transform_indices = @transform_0, window_bounds = array<i64: 4, 16>}, {pipeline_mode = #tpu.pipeline_mode<synchronous>, transform_indices = @transform_1, window_bounds = array<i64: 2, 128>}, {transform_indices = @transform_2, window_bounds = array<i64: 4, 128>}]} {
    %c0 = arith.constant 0 : index
    %c0_0 = arith.constant 0 : index
    %0 = vector.load %arg1[%c0, %c0_0] : memref<4x16xf32, #tpu.memory_space<vmem>>, vector<4x16xf32>
    %1 = vector.extract_strided_slice %0 {offsets = [0, 0], sizes = [4, 4], strides = [1, 1]} : vector<4x16xf32> to vector<4x4xf32>
    %2 = tpu.concatenate %1, %1, %1, %1, %1, %1, %1, %1 in 1 : vector<4x4xf32>, vector<4x4xf32>, vector<4x4xf32>, vector<4x4xf32>, vector<4x4xf32>, vector<4x4xf32>, vector<4x4xf32>, vector<4x4xf32> -> vector<4x32xf32>
    %3 = vector.extract_strided_slice %0 {offsets = [0, 4], sizes = [4, 4], strides = [1, 1]} : vector<4x16xf32> to vector<4x4xf32>
    %4 = tpu.concatenate %3, %3, %3, %3, %3, %3, %3, %3 in 1 : vector<4x4xf32>, vector<4x4xf32>, vector<4x4xf32>, vector<4x4xf32>, vector<4x4xf32>, vector<4x4xf32>, vector<4x4xf32>, vector<4x4xf32> -> vector<4x32xf32>
    %5 = vector.extract_strided_slice %0 {offsets = [0, 8], sizes = [4, 4], strides = [1, 1]} : vector<4x16xf32> to vector<4x4xf32>
    %6 = tpu.concatenate %5, %5, %5, %5, %5, %5, %5, %5 in 1 : vector<4x4xf32>, vector<4x4xf32>, vector<4x4xf32>, vector<4x4xf32>, vector<4x4xf32>, vector<4x4xf32>, vector<4x4xf32>, vector<4x4xf32> -> vector<4x32xf32>
    %7 = vector.extract_strided_slice %0 {offsets = [0, 12], sizes = [4, 4], strides = [1, 1]} : vector<4x16xf32> to vector<4x4xf32>
    %8 = tpu.concatenate %7, %7, %7, %7, %7, %7, %7, %7 in 1 : vector<4x4xf32>, vector<4x4xf32>, vector<4x4xf32>, vector<4x4xf32>, vector<4x4xf32>, vector<4x4xf32>, vector<4x4xf32>, vector<4x4xf32> -> vector<4x32xf32>
    %9 = tpu.concatenate %2, %4, %6, %8 in 1 : vector<4x32xf32>, vector<4x32xf32>, vector<4x32xf32>, vector<4x32xf32> -> vector<4x128xf32>
    %c0_1 = arith.constant 0 : index
    %c0_2 = arith.constant 0 : index
    %10 = vector.load %arg2[%c0_1, %c0_2] : memref<2x128xf32, #tpu.memory_space<vmem>>, vector<1x128xf32>
    %c1 = arith.constant 1 : index
    %c0_3 = arith.constant 0 : index
    %11 = vector.load %arg2[%c1, %c0_3] : memref<2x128xf32, #tpu.memory_space<vmem>>, vector<1x128xf32>
    %12 = vector.broadcast %10 : vector<1x128xf32> to vector<4x128xf32>
    %13 = arith.mulf %9, %12 : vector<4x128xf32>
    %14 = vector.broadcast %11 : vector<1x128xf32> to vector<4x128xf32>
    %15 = arith.addf %13, %14 : vector<4x128xf32>
    %16 = math.cos %15 : vector<4x128xf32>
    %c0_4 = arith.constant 0 : index
    %c0_5 = arith.constant 0 : index
    %17 = vector.load %arg3[%c0_4, %c0_5] : memref<4x128xf32, #tpu.memory_space<vmem>>, vector<4x128xf32>
    tpu.vector_store %arg3[%c0_4, %c0_5], %16 {strides = array<i32>} : memref<4x128xf32, #tpu.memory_space<vmem>>, vector<4x128xf32>,
    return
  }
  func.func @transform_0(%arg0: i32) -> (i32, i32) {
    %c0_i32 = arith.constant 0 : i32
    %c0_i32_0 = arith.constant 0 : i32
    return %arg0, %c0_i32 : i32, i32
  }
  func.func @transform_1(%arg0: i32) -> (i32, i32) {
    %c0_i32 = arith.constant 0 : i32
    %c0_i32_0 = arith.constant 0 : i32
    %c0_i32_1 = arith.constant 0 : i32
    return %c0_i32, %c0_i32_0 : i32, i32
  }
  func.func @transform_2(%arg0: i32) -> (i32, i32) {
    %c0_i32 = arith.constant 0 : i32
    %c0_i32_0 = arith.constant 0 : i32
    return %arg0, %c0_i32 : i32, i32
  }
}

</mosaic_0001>

<bundles_post_ra>
// kernel: _forward.1
= control target key start
LH: loop header
LB: loop body
LE: loop exit
PB: predicated region body
PF: predicated region fallthrough
CT: control target
= control target key end

     0   :  { %s249_s11 = smov 120   ;;  %s250_s12 = smov 124   ;;  %vm34_vm0 = vcmask 31744   ;;  %vm36_vm1 = vcmask 64512   ;;  %vm38_vm2 = vcmask 97280   ;;  %vm40_vm3 = vcmask 130048   ;;  %s344_s0 = inlined_call_operand.vmem [shape: f32[4,16], index: 0, kind: input, shape index: {}]   ;;  %s345_s1 = inlined_call_operand.vmem [shape: f32[2,128], index: 1, kind: input, shape index: {}]   ;;  %s346_s2 = inlined_call_operand.vmem [shape: f32[4,128], index: 2, kind: output, shape index: {}]  }
   0x1   :  { %v11_v0 = vld [vmem:[%s344_s0] sm:$0xf]  ;;  %s251_s13 = smov 8   ;;  %s252_s14 = smov 4   ;;  %vm42_vm4 = vcmask 162816   ;;  %vm44_vm5 = vcmask 195584  }
   0x2   :  { %58 = vrot.lane.b32.xlu1 %v11_v0, %s249_s11  ;;  %48 = vrot.lane.b32.xlu0 %v11_v0, %s250_s12  ;;  %s253_s15 = smov 12   ;;  %s254_s16 = smov 116   ;;  %vm46_vm6 = vcmask 228352   ;;  %vm90_vm7 = vcmask 261120   ;;  %vm92_vm8 = vcmask 523264   ;;  %vm94_vm9 = vcmask 785408  }
   0x3   :  { %s255_s17 = smov 16   ;;  %s256_s18 = smov 20   ;;  %v216_v42 = vld [vmem:[%s345_s1] ss:$0 sm:$0xff]  ;;  %v217_v45 = vld [vmem:[%s345_s1 + $0x1] ss:$0 sm:$0xff] }
   0x4   :  { %s257_s19 = smov 24   ;;  %s258_s20 = smov 28   ;;  %v262_v59 = vmov 683565275   ;;  %v263_v61 = vmov 2475754826  }
   0x5   :  { %s259_s0 = smov 64   ;;  %s260_s21 = smov 32  }
   0x6   :  { %16 = vrot.lane.b32.xlu1 %v11_v0, %s251_s13  ;;  %13 = vrot.lane.b32.xlu0 %v11_v0, %s252_s14  ;;  %s261_s22 = smov 96  }
   0xa   :  { %19 = vrot.lane.b32.xlu1 %v11_v0, %s253_s15  ;;  %68 = vrot.lane.b32.xlu0 %v11_v0, %s254_s16 }
   0xe   :  { %22 = vrot.lane.b32.xlu0 %v11_v0, %s255_s17  ;;  %25 = vrot.lane.b32.xlu1 %v11_v0, %s256_s18 }
  0x12   :  { %28 = vrot.lane.b32.xlu0 %v11_v0, %s257_s19  ;;  %31 = vrot.lane.b32.xlu1 %v11_v0, %s258_s20 }
  0x74   :  { %v59_v1 = vpop.permute.xlu1 %58  ;;  %v49_v2 = vpop.permute.xlu0 %48 }
  0x75   :  { %v61_v3 = vsel %vm34_vm0, %v59_v1, %v49_v2  ;;  %v51_v8 = vsel %vm34_vm0, %v49_v2, %v11_v0 }
  0x76   :  { %v62_v9 = vsel %vm36_vm1, %v61_v3, %v11_v0  ;;  %v265_v3 = vmov 2102212464  }
  0x78   :  { %v17_v4 = vpop.permute.xlu1 %16  ;;  %v14_v5 = vpop.permute.xlu0 %13 }
  0x79   :  { %v35_v6 = vsel %vm34_vm0, %v11_v0, %v14_v5  ;;  %v52_v10 = vsel %vm36_vm1, %v51_v8, %v14_v5  ;;  %v63_v11 = vsel %vm38_vm2, %v62_v9, %v14_v5  ;;  %v267_v9 = vmov 1326507024  }
  0x7a   :  { %v37_v7 = vsel %vm36_vm1, %v35_v6, %v17_v4  ;;  %v53_v17 = vsel %vm38_vm2, %v52_v10, %v17_v4  ;;  %v64_v18 = vsel %vm40_vm3, %v63_v11, %v17_v4  ;;  %v266_v6 = vmov 920167782  }
  0x7c   :  { %v20_v12 = vpop.permute.xlu1 %19  ;;  %v69_v13 = vpop.permute.xlu0 %68 }
  0x7d   :  { %v39_v14 = vsel %vm38_vm2, %v37_v7, %v20_v12  ;;  %v71_v15 = vsel %vm34_vm0, %v69_v13, %v59_v1  ;;  %v54_v20 = vsel %vm40_vm3, %v53_v17, %v20_v12  ;;  %v65_v21 = vsel %vm42_vm4, %v64_v18, %v20_v12 }
  0x7e   :  { %v72_v16 = vsel %vm36_vm1, %v71_v15, %v49_v2 }
  0x7f   :  { %v73_v19 = vsel %vm38_vm2, %v72_v16, %v11_v0  ;;  %v264_v0 = vmov 2131351028  }
  0x80   :  { %v23_v22 = vpop.permute.xlu0 %22  ;;  %v26_v23 = vpop.permute.xlu1 %25  ;;  %v74_v24 = vsel %vm40_vm3, %v73_v19, %v14_v5 }
  0x81   :  { %v41_v25 = vsel %vm40_vm3, %v39_v14, %v23_v22  ;;  %v55_v26 = vsel %vm42_vm4, %v54_v20, %v23_v22  ;;  %v66_v27 = vsel %vm44_vm5, %v65_v21, %v23_v22  ;;  %v75_v30 = vsel %vm42_vm4, %v74_v24, %v17_v4 }
  0x82   :  { %v43_v28 = vsel %vm42_vm4, %v41_v25, %v26_v23  ;;  %v67_v29 = vsel %vm46_vm6, %v66_v27, %v26_v23  ;;  %v56_v31 = vsel %vm44_vm5, %v55_v26, %v26_v23  ;;  %v76_v37 = vsel %vm44_vm5, %v75_v30, %v20_v12 }
  0x83   :  { %83 = vrot.lane.b32.xlu1 %v67_v29, %s259_s0  ;;  %v77_v38 = vsel %vm46_vm6, %v76_v37, %v23_v22 }
  0x84   :  { %v29_v32 = vpop.permute.xlu0 %28  ;;  %v32_v33 = vpop.permute.xlu1 %31 }
  0x85   :  { %v45_v34 = vsel %vm44_vm5, %v43_v28, %v29_v32  ;;  %v57_v35 = vsel %vm46_vm6, %v56_v31, %v29_v32 }
  0x86   :  { %v47_v36 = vsel %vm46_vm6, %v45_v34, %v32_v33  ;;  %79 = vrot.lane.b32.xlu0 %v57_v35, %s260_s21 }
  0x8a   :  { %87 = vrot.lane.b32.xlu0 %v77_v38, %s261_s22 }
  0xf5   :  { %v84_v41 = vpop.permute.xlu1 %83 }
  0xf8   :  { %v80_v39 = vpop.permute.xlu0 %79 }
  0xf9   :  { %v91_v40 = vsel %vm90_vm7, %v47_v36, %v80_v39 }
  0xfa   :  { %v93_v44 = vsel %vm92_vm8, %v91_v40, %v84_v41 }
  0xfc   :  { %v88_v43 = vpop.permute.xlu0 %87 }
  0xfd   :  { %v95_v46 = vsel %vm94_vm9, %v93_v44, %v88_v43 }
  0xfe   :  { %v102_v47 = vmul.f32 %v216_v42, %v95_v46 }
 0x100   :  { %v320_v48 = vadd.f32 %v217_v45, %v102_v47 }
 0x102   :  { %v111_v49 = vand.u32 2139095040, %v320_v48  ;;  %v108_v53 = vand.u32 2147483647, %v320_v48  ;;  %vm110_vm1 = vcmp.lt.s32.totalorder %v320_v48, 0  ;;  %vm200_vm6 = vweird.f32 %v320_v48 }
 0x104   :  { %v112_v50 = vshrl.u32 %v111_v49, 23  ;;  %v115_v56 = vand.u32 8388607, %v108_v53  ;;  %vm109_vm2 = vcmp.le.f32.partialorder %v108_v53, 0.7853982 }
 0x106   :  { %v218_v51 = vadd.s32 4294967169, %v112_v50  ;;  %v116_v11 = vor.u32 8388608, %v115_v56 }
 0x108   :  { %v118_v52 = vadd.s32 1, %v218_v51  ;;  %v156_v25 = vshll.u32 %v116_v11, 8 }
 0x10a   :  { %vm119_vm10 = vcmp.gt.s32.totalorder %v118_v52, 0 }
 0x10b   :  { %v120_v54 = vsel %vm119_vm10, %v118_v52, 0 }
 0x10c   :  { %v122_v55 = vand.u32 31, %v120_v54  ;;  %v121_v58 = vshrl.u32 %v120_v54, 5 }
 0x10e   :  { %v123_v57 = vsub.s32 32, %v122_v55  ;;  %v125_v60 = vshll.u32 %v262_v59, %v122_v55  ;;  %v128_v62 = vshll.u32 %v263_v61, %v122_v55  ;;  %v131_v2 = vshll.u32 %v264_v0, %v122_v55 }
 0x10f   :  { %v134_v5 = vshll.u32 %v265_v3, %v122_v55  ;;  %v137_v8 = vshll.u32 %v266_v6, %v122_v55  ;;  %vm140_vm11 = vcmp.lt.s32.totalorder %v121_v58, 1  ;;  %vm143_vm12 = vcmp.lt.s32.totalorder %v121_v58, 4 }
 0x110   :  { %v126_v63 = vshrl.u32 %v263_v61, %v123_v57  ;;  %v129_v1 = vshrl.u32 %v264_v0, %v123_v57  ;;  %v132_v4 = vshrl.u32 %v265_v3, %v123_v57  ;;  %v135_v7 = vshrl.u32 %v266_v6, %v123_v57 }
 0x111   :  { %v138_v10 = vshrl.u32 %v267_v9, %v123_v57  ;;  %v124_v20 = vshrl.u32 %v262_v59, %v123_v57  ;;  %vm142_vm13 = vcmp.lt.s32.totalorder %v121_v58, 3  ;;  %vm141_vm14 = vcmp.lt.s32.totalorder %v121_v58, 2 }
 0x112   :  { %v127_v12 = vor.u32 %v126_v63, %v125_v60  ;;  %v130_v13 = vor.u32 %v129_v1, %v128_v62  ;;  %v133_v14 = vor.u32 %v132_v4, %v131_v2  ;;  %v136_v15 = vor.u32 %v135_v7, %v134_v5 }
 0x113   :  { %v139_v16 = vor.u32 %v138_v10, %v137_v8 }
 0x114   :  { %v145_v17 = vsel %vm143_vm12, %v133_v14, 2102212464  ;;  %v148_v18 = vsel %vm140_vm11, %v127_v12, %v130_v13  ;;  %v152_v19 = vsel %vm140_vm11, %v130_v13, %v133_v14  ;;  %v149_v21 = vsel %vm143_vm12, %v136_v15, 920167782 }
 0x115   :  { %v153_v22 = vsel %vm143_vm12, %v139_v16, 1326507024  ;;  %v150_v23 = vsel %vm142_vm13, %v133_v14, %v149_v21  ;;  %v144_v26 = vsel %vm140_vm11, %v124_v20, %v127_v12  ;;  %v146_v27 = vsel %vm142_vm13, %v130_v13, %v145_v17 }
 0x116   :  { %v154_v24 = vsel %vm142_vm13, %v136_v15, %v153_v22  ;;  %v151_v28 = vsel %vm141_vm14, %v148_v18, %v150_v23  ;;  %v147_v34 = vsel %vm141_vm14, %v144_v26, %v146_v27 }
 0x117   :  { %v155_v29 = vsel %vm141_vm14, %v152_v19, %v154_v24  ;;  %v329_v32 = vmul.u32.u64.low %v156_v25, %v151_v28  ;;  %v330_v33 = vmul.u32.u64.high %v156_v25, %v151_v28, %v329_v32  ;;  %v163_v36 = vmul.u32 %v156_v25, %v147_v34 }
 0x118   :  { %v326_v30 = vmul.u32.u64.low %v156_v25, %v155_v29  ;;  %v327_v31 = vmul.u32.u64.high %v156_v25, %v155_v29, %v326_v30 }
 0x119   :  { %v166_v35 = vadd.s32 1, %v330_v33 }
 0x11a   :  { %vm165_vm15 = vc.u32 %v327_v31, %v329_v32  ;;  %v164_v49 = vadd.s32 %v329_v32, %v327_v31 }
 0x11b   :  { %v167_v37 = vsel %vm165_vm15, %v166_v35, %v330_v33 }
 0x11c   :  { %v168_v38 = vadd.s32 %v167_v37, %v163_v36 }
 0x11e   :  { %v169_v39 = vadd.s32 536870912, %v168_v38 }
 0x120   :  { %v170_v40 = vshrl.u32 %v169_v39, 30 }
 0x122   :  { %v171_v41 = vshll.u32 %v170_v40, 30  ;;  %v194_v0 = vsub.s32 4, %v170_v40 }
 0x124   :  { %v172_v42 = vsub.s32 %v168_v38, %v171_v41  ;;  %v195_v2 = vsel %vm110_vm1, %v194_v0, %v170_v40 }
 0x125   :  { %v197_v3 = vsel %vm109_vm2, 0, %v195_v2 }
 0x126   :  { %v174_v43 = vsub.s32 0, %v172_v42  ;;  %v201_v4 = vand.u32 3, %v197_v3 }
 0x128   :  { %v219_v44 = vmin.u32 %v174_v43, %v172_v42  ;;  %vm206_vm3 = vcmp.eq.s32.totalorder %v201_v4, 2  ;;  %vm203_vm4 = vcmp.eq.s32.totalorder %v201_v4, 0  ;;  %vm202_vm5 = vcmp.lt.s32.totalorder %v201_v4, 2 }
 0x12a   :  { %v176_v45 = vclz %v219_v44 }
 0x12c   :  { %v220_v46 = vadd.s32 4294967294, %v176_v45 }
 0x12e   :  { %vm221_vm0 = vcmp.lt.s32.totalorder %v220_v46, 0 }
 0x12f   :  { %v179_v47 = vsel %vm221_vm0, 0, %v220_v46 }
 0x130   :  { %v180_v50 = vsub.s32 32, %v179_v47  ;;  %v184_v51 = vsub.s32 4294967266, %v179_v47  ;;  %v181_v52 = vshll.u32 %v172_v42, %v179_v47 }
 0x132   :  { %v182_v54 = vshrl.u32 %v164_v49, %v180_v50  ;;  %v185_v55 = vadd.s32 127, %v184_v51 }
 0x134   :  { %v183_v56 = vor.u32 %v182_v54, %v181_v52  ;;  %v186_v57 = vshll.u32 %v185_v55, 23 }
 0x136   :  { %v187_v58 = vor.u32 4788187, %v186_v57  ;;  %v190_v60 = vcvt.s32.f32 %v183_v56 }
 0x138   :  { %v188_v59 = vand.u32 2147483647, %v187_v58 }
 0x13a   :  { %v191_v61 = vmul.f32 %v190_v60, %v188_v59 }
 0x13c   :  { %v192_v62 = vxor.u32 2147483648, %v191_v61 }
 0x13e   :  { %v193_v63 = vsel %vm110_vm1, %v192_v62, %v191_v61 }
 0x13f   :  { %v196_v1 = vsel %vm109_vm2, %v320_v48, %v193_v63 }
 0x140   :  { %245 = vcosq.f32 %v196_v1 }
 0x141   :  { %247 = vsinq.f32 %v196_v1 }
 0x14a   :  { %v246_v5 = vpop.eup %245 }
 0x14b   :  { %v248_v6 = vpop.eup %247  ;;  %v207_v7 = vxor.u32 2147483648, %v246_v5 }
 0x14c   :  { %v204_v8 = vxor.u32 2147483648, %v248_v6 }
 0x14d   :  { %v208_v9 = vsel %vm206_vm3, %v207_v7, %v248_v6 }
 0x14e   :  { %v205_v10 = vsel %vm203_vm4, %v246_v5, %v204_v8 }
 0x14f   :  { %v209_v53 = vsel %vm202_vm5, %v205_v10, %v208_v9 }
 0x150   :  { %v210_v11 = vsel %vm200_vm6, nan, %v209_v53 }
 0x151   :  { %211 = vst [vmem:[%s346_s2] sm:$0xf] %v210_v11 }

</bundles_post_ra>
